<compile_context>
chip_gen: v5e
topology: v5e:2x2
jax: 0.10.0
libtpu: 0.0.40
codegen_flags: <defaults>
</compile_context>

<pallas_src>
import jax
import jax.numpy as jnp
from jax.experimental import pallas as pl
from jax.experimental.pallas import tpu as pltpu


def fused_conv1x1_kernel(x_ref, w_ref, b_ref, o_ref):
    # x_ref: (1, Cin, S)  zero-padded input for one batch element, S on the lane axis
    # w_ref: (Cout, Cin)  1x1 conv weight
    # b_ref: (Cout, 1)    bias (column vector so it lane-broadcasts)
    # o_ref: (1, Cout, S) output block
    cin = x_ref.shape[1]

    w = w_ref[...].astype(jnp.float32)      # (Cout, Cin)
    b = b_ref[...].astype(jnp.float32)      # (Cout, 1)

    # 1x1 conv over the zero-padded input == per-pixel channel mix on the VPU.
    # (Cin = Cout = 3 would waste the MXU; broadcasted FMAs keep it pure VPU.)
    acc = None
    for c in range(cin):
        x_c = x_ref[0, c:c + 1, :].astype(jnp.float32)   # (1, S), sublane-broadcast
        term = w[:, c:c + 1] * x_c                       # (Cout, 1)*(1, S) -> (Cout, S)
        acc = term if acc is None else acc + term
    y = acc + b                                          # x2 (== x5): conv output

    relu_y = jnp.maximum(y, 0.0)                         # x6: relu(x5)
    relu6_y = jnp.minimum(relu_y, 6.0)                   # x4: clamp_max(clamp_min(x2,0),6)
    out = (y + relu_y) * relu6_y * (1.0 / 6.0)           # ((x2 + relu) * relu6) / 6

    # single aligned, lane-dense store of the whole (Cout, S) block
    o_ref[0] = out.astype(o_ref.dtype)


def model_forward(x_nchw, weight, bias):
    """weight: (Cout, Cin, 1, 1), bias: (Cout,). Returns NCHW output (N, Cout, H+2, W+2)."""
    N, Cin, H, W = x_nchw.shape
    Cout = weight.shape[0]
    Hp, Wp = H + 2, W + 2
    S = Hp * Wp

    # Zero-pad spatial dims directly in NCHW (single cheap pass; no transposes).
    # Padded border pixels see zero input -> conv gives bias there, which is exactly
    # what Conv2d(padding=1, kernel=1) produces, so no separate border fill is needed.
    x_pad = jnp.pad(x_nchw, ((0, 0), (0, 0), (1, 1), (1, 1)))
    # Contiguous reshape (free): flatten spatial onto the lane axis.
    x_flat = x_pad.reshape(N, Cin, S)

    w2 = weight.reshape(Cout, Cin).astype(jnp.float32)
    b2 = bias.reshape(Cout, 1).astype(jnp.float32)

    out_flat = pl.pallas_call(
        fused_conv1x1_kernel,
        out_shape=jax.ShapeDtypeStruct((N, Cout, S), x_nchw.dtype),
        grid_spec=pltpu.PrefetchScalarGridSpec(
            num_scalar_prefetch=0,
            grid=(N,),  # one padded image per step; 2 steps -> both v7x TCs busy
            in_specs=[
                pl.BlockSpec((1, Cin, S), lambda n: (n, 0, 0)),
                pl.BlockSpec((Cout, Cin), lambda n: (0, 0)),
                pl.BlockSpec((Cout, 1), lambda n: (0, 0)),
            ],
            out_specs=pl.BlockSpec((1, Cout, S), lambda n: (n, 0, 0)),
        ),
        compiler_params=pltpu.CompilerParams(
            dimension_semantics=("parallel",),
        ),
    )(x_flat, w2, b2)

    # Contiguous reshape back to NCHW-padded output (free, no HBM pass).
    return out_flat.reshape(N, Cout, Hp, Wp)


def _reference(x_nchw, weight, bias):
    # pure-JAX reference for sanity checking (same padded-NCHW math)
    Cout = weight.shape[0]
    Cin = weight.shape[1]
    x_pad = jnp.pad(x_nchw, ((0, 0), (0, 0), (1, 1), (1, 1)))
    y = jnp.einsum("oc,nchw->nohw", weight.reshape(Cout, Cin), x_pad)
    y = y + bias.reshape(1, Cout, 1, 1)
    relu_y = jnp.maximum(y, 0.0)
    relu6_y = jnp.minimum(relu_y, 6.0)
    return ((y + relu_y) * relu6_y) / 6.0


if __name__ == "__main__":
    key = jax.random.PRNGKey(0)
    kx, kw, kb = jax.random.split(key, 3)

    # small shapes consistent with the module: Conv2d(3, 3, 1, padding=1)
    x = jax.random.normal(kx, (2, 3, 16, 16), dtype=jnp.float32)
    weight = jax.random.normal(kw, (3, 3, 1, 1), dtype=jnp.float32) * 0.5
    bias = jax.random.normal(kb, (3,), dtype=jnp.float32) * 0.1

    out = jax.jit(model_forward)(x, weight, bias)
    out = jax.block_until_ready(out)

    ref = _reference(x, weight, bias)
    assert out.shape == (2, 3, 18, 18), out.shape
    assert jnp.allclose(out, ref, atol=1e-5, rtol=1e-5), "mismatch vs reference"

    print("KERNEL_OK")
</pallas_src>

<mosaic_0001>
module attributes {stable_mosaic.version = 11 : i64} {
  func.func @fused_conv1x1_kernel(%arg0: i32, %arg1: memref<1x3x324xf32, #tpu.memory_space<vmem>>, %arg2: memref<3x3xf32, #tpu.memory_space<vmem>>, %arg3: memref<3x1xf32, #tpu.memory_space<vmem>>, %arg4: memref<1x3x324xf32, #tpu.memory_space<vmem>>) attributes {dimension_semantics = [#tpu.dimension_semantics<parallel>], iteration_bounds = array<i64: 2>, scalar_prefetch = 0 : i64, scratch_operands = 0 : i64, tpu.core_type = #tpu.core_type<tc>, window_params = [{transform_indices = @transform_0, window_bounds = array<i64: 1, 3, 324>}, {pipeline_mode = #tpu.pipeline_mode<synchronous>, transform_indices = @transform_1, window_bounds = array<i64: 3, 3>}, {pipeline_mode = #tpu.pipeline_mode<synchronous>, transform_indices = @transform_2, window_bounds = array<i64: 3, 1>}, {transform_indices = @transform_3, window_bounds = array<i64: 1, 3, 324>}]} {
    %c0 = arith.constant 0 : index
    %c0_0 = arith.constant 0 : index
    %0 = vector.load %arg2[%c0, %c0_0] : memref<3x3xf32, #tpu.memory_space<vmem>>, vector<3x3xf32>
    %c0_1 = arith.constant 0 : index
    %c0_2 = arith.constant 0 : index
    %1 = vector.load %arg3[%c0_1, %c0_2] : memref<3x1xf32, #tpu.memory_space<vmem>>, vector<3x1xf32>
    %c0_3 = arith.constant 0 : index
    %c0_4 = arith.constant 0 : index
    %c0_5 = arith.constant 0 : index
    %2 = vector.load %arg1[%c0_3, %c0_4, %c0_5] : memref<1x3x324xf32, #tpu.memory_space<vmem>>, vector<1x1x324xf32>
    %3 = vector.shape_cast %2 : vector<1x1x324xf32> to vector<1x324xf32>
    %4 = vector.extract_strided_slice %0 {offsets = [0, 0], sizes = [3, 1], strides = [1, 1]} : vector<3x3xf32> to vector<3x1xf32>
    %5 = vector.broadcast %4 : vector<3x1xf32> to vector<3x324xf32>
    %6 = vector.broadcast %3 : vector<1x324xf32> to vector<3x324xf32>
    %7 = arith.mulf %5, %6 : vector<3x324xf32>
    %c0_6 = arith.constant 0 : index
    %c1 = arith.constant 1 : index
    %c0_7 = arith.constant 0 : index
    %8 = vector.load %arg1[%c0_6, %c1, %c0_7] : memref<1x3x324xf32, #tpu.memory_space<vmem>>, vector<1x1x324xf32>
    %9 = vector.shape_cast %8 : vector<1x1x324xf32> to vector<1x324xf32>
    %10 = vector.extract_strided_slice %0 {offsets = [0, 1], sizes = [3, 1], strides = [1, 1]} : vector<3x3xf32> to vector<3x1xf32>
    %11 = vector.broadcast %10 : vector<3x1xf32> to vector<3x324xf32>
    %12 = vector.broadcast %9 : vector<1x324xf32> to vector<3x324xf32>
    %13 = arith.mulf %11, %12 : vector<3x324xf32>
    %14 = arith.addf %7, %13 : vector<3x324xf32>
    %c0_8 = arith.constant 0 : index
    %c2 = arith.constant 2 : index
    %c0_9 = arith.constant 0 : index
    %15 = vector.load %arg1[%c0_8, %c2, %c0_9] : memref<1x3x324xf32, #tpu.memory_space<vmem>>, vector<1x1x324xf32>
    %16 = vector.shape_cast %15 : vector<1x1x324xf32> to vector<1x324xf32>
    %17 = vector.extract_strided_slice %0 {offsets = [0, 2], sizes = [3, 1], strides = [1, 1]} : vector<3x3xf32> to vector<3x1xf32>
    %18 = vector.broadcast %17 : vector<3x1xf32> to vector<3x324xf32>
    %19 = vector.broadcast %16 : vector<1x324xf32> to vector<3x324xf32>
    %20 = arith.mulf %18, %19 : vector<3x324xf32>
    %21 = arith.addf %14, %20 : vector<3x324xf32>
    %22 = vector.broadcast %1 : vector<3x1xf32> to vector<3x324xf32>
    %23 = arith.addf %21, %22 : vector<3x324xf32>
    %cst = arith.constant 0.000000e+00 : f32
    %24 = vector.broadcast %cst : f32 to vector<3x324xf32>
    %25 = arith.maximumf %23, %24 : vector<3x324xf32>
    %cst_10 = arith.constant 6.000000e+00 : f32
    %26 = vector.broadcast %cst_10 : f32 to vector<3x324xf32>
    %27 = arith.minimumf %25, %26 : vector<3x324xf32>
    %28 = arith.addf %23, %25 : vector<3x324xf32>
    %29 = arith.mulf %28, %27 : vector<3x324xf32>
    %cst_11 = arith.constant 0.166666672 : f32
    %30 = vector.broadcast %cst_11 : f32 to vector<3x324xf32>
    %31 = arith.mulf %29, %30 : vector<3x324xf32>
    %c0_12 = arith.constant 0 : index
    %c0_13 = arith.constant 0 : index
    %c0_14 = arith.constant 0 : index
    %32 = vector.load %arg4[%c0_12, %c0_13, %c0_14] : memref<1x3x324xf32, #tpu.memory_space<vmem>>, vector<1x3x324xf32>
    %33 = vector.shape_cast %32 : vector<1x3x324xf32> to vector<3x324xf32>
    %34 = vector.shape_cast %31 : vector<3x324xf32> to vector<1x3x324xf32>
    tpu.vector_store %arg4[%c0_12, %c0_13, %c0_14], %34 {strides = array<i32>} : memref<1x3x324xf32, #tpu.memory_space<vmem>>, vector<1x3x324xf32>,
    return
  }
  func.func @transform_0(%arg0: i32) -> (i32, i32, i32) {
    %c0_i32 = arith.constant 0 : i32
    %c0_i32_0 = arith.constant 0 : i32
    %c0_i32_1 = arith.constant 0 : i32
    return %arg0, %c0_i32, %c0_i32_0 : i32, i32, i32
  }
  func.func @transform_1(%arg0: i32) -> (i32, i32) {
    %c0_i32 = arith.constant 0 : i32
    %c0_i32_0 = arith.constant 0 : i32
    %c0_i32_1 = arith.constant 0 : i32
    return %c0_i32, %c0_i32_0 : i32, i32
  }
  func.func @transform_2(%arg0: i32) -> (i32, i32) {
    %c0_i32 = arith.constant 0 : i32
    %c0_i32_0 = arith.constant 0 : i32
    %c0_i32_1 = arith.constant 0 : i32
    return %c0_i32, %c0_i32_0 : i32, i32
  }
  func.func @transform_3(%arg0: i32) -> (i32, i32, i32) {
    %c0_i32 = arith.constant 0 : i32
    %c0_i32_0 = arith.constant 0 : i32
    %c0_i32_1 = arith.constant 0 : i32
    return %arg0, %c0_i32, %c0_i32_0 : i32, i32, i32
  }
}

</mosaic_0001>

<bundles_post_ra>
// kernel: model_forward.1
= control target key start
LH: loop header
LB: loop body
LE: loop exit
PB: predicated region body
PF: predicated region fallthrough
CT: control target
= control target key end

     0   :  { %s373_s12 = smov 0   ;;  %s403_s0 = inlined_call_operand.vmem [shape: f32[2,3,324], index: 0, kind: input, shape index: {}]   ;;  %s404_s1 = inlined_call_operand.vmem [shape: f32[3,3], index: 1, kind: input, shape index: {}]   ;;  %s405_s2 = inlined_call_operand.vmem [shape: f32[3,1], index: 2, kind: input, shape index: {}]   ;;  %s406_s3 = inlined_call_operand.vmem [shape: f32[2,3,324], index: 3, kind: output, shape index: {}]  }
   0x1 LB: > { %s314_s13 = sadd.s32 4294967295, %s348_s12   ;;  %p318_p0 = scmp.ge.s32.totalorder %s348_s12, 1  ;;  %s348_s12 = sphi %s373_s12, %s13_s12  }
   0x2   : > { %p137_p1 = scmp.lt.s32.totalorder %s348_s12, 3 }
   0x4   : > { %p138_p2 = pnand %p318_p0, %p137_p1 }
   0x5   : > { %p161_p3 = scmp.lt.s32.totalorder (!%p138_p2), %s314_s13, 1 }
   0x6   : > { %141 = sbr.rel (%p138_p2) target bundleno = 158 (0x9e), region = 32 }
   0xb   : > { %v171_v0 = vld [vmem:[%s404_s1] sm:$0x7]  ;;  %v350_v1 = vmov 0   ;;  %v351_v2 = vmov 2   ;;  %v352_v4 = vmov 1   ;;  %s408_s13 = smov (!%p161_p3, %s314_s13), 1 }
   0xc   : > { %337 = vset.pattern.permute.xlu0 %v350_v1  ;;  %339 = vset.pattern.permute.xlu1 %v351_v2  ;;  %v172_v3 = vld [vmem:[%s405_s2] sm:$0x7]  ;;  %s325_s18 = smul.u32 12, %s408_s13  ;;  %vm257_vm0 = vcmask 550912   ;;  %vm253_vm1 = vcmask 1043456  }
   0xd   : > { %176 = vperm.xlu0 %337, %v171_v0   ;;  %211 = vperm.xlu1 %339, %v171_v0  }
   0xe   : > { %s165_s21 = scalar_lea.vmem %s403_s0, %s325_s18  ;;  %s170_s24 = scalar_lea.vmem %s406_s3, %s325_s18 }
   0xf   : > { %v173_v6 = vld [vmem:[%s165_s21] ss:$4 sm:$0x7]  ;;  %v321_v8 = vld [vmem:[%s165_s21 + $0x1] ss:$4 sm:$0x7] }
  0x10   : > { %v322_v9 = vld [vmem:[%s165_s21 + $0x2] ss:$4 sm:$0x7]  ;;  %v180_v10 = vperm.slane %v173_v6, 0  ;;  %v181_v11 = vperm.slane %v173_v6, 1  ;;  %v182_v12 = vperm.slane %v173_v6, 2 }
  0x11   : > { %v196_v13 = vperm.slane %v321_v8, 0  ;;  %v197_v14 = vperm.slane %v321_v8, 1  ;;  %v198_v15 = vperm.slane %v321_v8, 2  ;;  %v215_v16 = vperm.slane %v322_v9, 0 }
  0x12   : > { %v216_v17 = vperm.slane %v322_v9, 1  ;;  %v217_v18 = vperm.slane %v322_v9, 2 }
  0x15   : > { %338 = vset.pattern.permute.xlu0 %v352_v4  ;;  %340 = vset.pattern.permute.xlu1 %v350_v1 }
  0x16   : > { %192 = vperm.xlu0 %338, %v171_v0   ;;  %229 = vperm.xlu1 %340, %v172_v3  }
  0x1e   : > { %341 = vset.pattern.permute.xlu0 %v350_v1 }
  0x7f   : > { %v177_v5 = vpop.permute.xlu0 %176  ;;  %v212_v7 = vpop.permute.xlu1 %211 }
  0x80   : > { %v186_v19 = vmul.f32 %v180_v10, %v177_v5  ;;  %v187_v20 = vmul.f32 %v181_v11, %v177_v5  ;;  %v188_v22 = vmul.f32 %v182_v12, %v177_v5  ;;  %v221_v26 = vmul.f32 %v215_v16, %v212_v7 }
  0x81   : > { %v222_v27 = vmul.f32 %v216_v17, %v212_v7  ;;  %v223_v28 = vmul.f32 %v217_v18, %v212_v7 }
  0x88   : > { %v193_v21 = vpop.permute.xlu0 %192  ;;  %v230_v32 = vpop.permute.xlu1 %229 }
  0x89   : > { %v202_v23 = vmul.f32 %v196_v13, %v193_v21  ;;  %v203_v24 = vmul.f32 %v197_v14, %v193_v21  ;;  %v204_v25 = vmul.f32 %v198_v15, %v193_v21 }
  0x8b   : > { %v205_v29 = vadd.f32 %v202_v23, %v186_v19  ;;  %v206_v30 = vadd.f32 %v203_v24, %v187_v20  ;;  %v207_v31 = vadd.f32 %v204_v25, %v188_v22 }
  0x8d   : > { %v224_v33 = vadd.f32 %v221_v26, %v205_v29  ;;  %v225_v34 = vadd.f32 %v222_v27, %v206_v30  ;;  %v226_v35 = vadd.f32 %v223_v28, %v207_v31 }
  0x8f   : > { %v232_v36 = vadd.f32 %v230_v32, %v224_v33  ;;  %v233_v37 = vadd.f32 %v230_v32, %v225_v34  ;;  %v234_v38 = vadd.f32 %v230_v32, %v226_v35 }
  0x91   : > { %v235_v39 = vmax.f32 %v232_v36, 0.0  ;;  %v236_v40 = vmax.f32 %v233_v37, 0.0  ;;  %v237_v41 = vmax.f32 %v234_v38, 0.0 }
  0x93   : > { %v238_v42 = vmin.f32 %v235_v39, 6.0  ;;  %v239_v43 = vmin.f32 %v236_v40, 6.0  ;;  %v240_v44 = vmin.f32 %v237_v41, 6.0  ;;  %v241_v45 = vadd.f32 %v235_v39, %v232_v36 }
  0x94   : > { %v242_v46 = vadd.f32 %v236_v40, %v233_v37  ;;  %v243_v47 = vadd.f32 %v237_v41, %v234_v38 }
  0x95   : > { %v244_v48 = vmul.f32 %v241_v45, %v238_v42 }
  0x96   : > { %v245_v49 = vmul.f32 %v242_v46, %v239_v43  ;;  %v246_v50 = vmul.f32 %v243_v47, %v240_v44 }
  0x97   : > { %v247_v53 = vmul.f32 0.16666667, %v244_v48 }
  0x98   : > { %v248_v51 = vmul.f32 0.16666667, %v245_v49  ;;  %v249_v52 = vmul.f32 0.16666667, %v246_v50 }
  0x9a   : > { %v252_v54 = vrot.slane %v248_v51, 4  ;;  %258 = vst.msk [vmem:[%s170_s24 + $0x8] sm:$0x7] %vm257_vm0, %v249_v52 }
  0x9c   : > { %v254_v55 = vsel %vm253_vm1, %v247_v53, %v252_v54 }
  0x9d   : > { %256 = vst [vmem:[%s170_s24] sm:$0x77] %v254_v55 }
  0x9e PF: > { %s13_s12 = sadd.s32 1, %s348_s12  }
  0x9f   : > { %p10_p4 = scmp.ge.s32.totalorder %s13_s12, 4  }
  0xa1   :  { %12 = sbr.rel (!%p10_p4) target bundleno = 1 (0x1), region = 64 }

</bundles_post_ra>
